<compile_context>
chip_gen: v7x
topology: tpu7x:2x2x1
jax: 0.10.0
libtpu: 0.0.40
codegen_flags: <defaults>
</compile_context>

<pallas_src>
import math
from functools import partial

import numpy as np
import jax
import jax.numpy as jnp
from jax.experimental import pallas as pl
from jax.experimental.pallas import tpu as pltpu


# ------------------------------------------------------------------ DCT basis
def build_filter(pos, freq, POS):
    result = math.cos(math.pi * freq * (pos + 0.5) / POS) / math.sqrt(POS)
    if freq == 0:
        return result
    return result * math.sqrt(2)


def generate_dct_matrix(h=8, w=8):
    matrix = np.zeros((h, w, h, w), dtype=np.float64)
    for u in range(h):
        for v in range(w):
            for i in range(h):
                for j in range(w):
                    matrix[u, v, i, j] = build_filter(i, u, h) * build_filter(j, v, w)
    return matrix.reshape(-1, h, w)  # (h*w, h, w)


# --------------------------------------------------------------- Pallas kernel
def _make_dct_kernel(bt):
    """out[b, uv, p] = D[uv, ij] @ patches[b, ij, p] for the bt channel-images."""
    if bt <= 16:
        # One batched MXU contraction per grid step (review item 2).  The basis
        # broadcast costs bt*16 KiB of VMEM/vregs — negligible at bt<=16.
        def kernel(d_ref, p_ref, o_ref):
            d = d_ref[...]                                   # (hw, hw), resident
            d_b = jnp.broadcast_to(d[None, :, :], (bt,) + d.shape)
            o_ref[...] = jax.lax.dot_general(
                d_b, p_ref[...],
                dimension_numbers=(((2,), (1,)), ((0,), (0,))),  # contract ij, batch b
                preferred_element_type=jnp.float32,
            ).astype(o_ref.dtype)
    else:
        # Large batch tiles (small-image path): a broadcast basis would cost
        # bt*16 KiB of VMEM, so loop with a fori_loop (bounded live ranges, no
        # trace bloat) and 2-D dots on dynamically indexed leading slices.
        def kernel(d_ref, p_ref, o_ref):
            d = d_ref[...]

            def body(b, carry):
                o_ref[b] = jnp.dot(
                    d, p_ref[b], preferred_element_type=jnp.float32
                ).astype(o_ref.dtype)
                return carry

            jax.lax.fori_loop(0, bt, body, 0, unroll=min(bt, 8))

    return kernel


# -------------------------------------------------------------------- tiling
def _choose_tiles(B, P, hw, elt_bytes, *, max_lane_tile=4096,
                  target_bytes=4 << 20, max_batch_tile=512):
    cdiv = lambda a, b: -(-a // b)

    # Lane (patch-index) tile: full extent when modest (always a legal block and
    # no ragged masked tail), else the largest multiple of 128 (never 0).
    if P <= 512:
        pt = P
    else:
        pt = max(128, (min(P, max(128, max_lane_tile)) // 128) * 128)

    # Batch (channel-image) tile so one input block is ~target_bytes.
    per_b = hw * pt * elt_bytes
    bt = int(max(1, min(B, max_batch_tile, target_bytes // per_b)))

    # Multi-TensorCore (v7x) balance: expose a few parallel grid steps.
    # Shrinking bt is free (same total bytes); shrink pt only as a last resort,
    # keeping it a multiple of 128.
    while cdiv(B, bt) * cdiv(P, pt) < 4 and bt > 1:
        bt = cdiv(bt, 2)
    while cdiv(B, bt) * cdiv(P, pt) < 4 and pt >= 1024:
        pt = max(128, (pt // 2) // 128 * 128)

    return bt, int(pt)


# ------------------------------------------------------------------- wrapper
@partial(jax.jit, static_argnames=("h", "w", "stream_dtype", "max_lane_tile",
                                   "fuse_patch_extract"))
def dct_layer_forward(x, dct_basis, h=8, w=8, *, stream_dtype=jnp.float32,
                      max_lane_tile=4096, fuse_patch_extract=True):
    """Pallas implementation of dct_layer.forward.

    x:         (N, C, H, W) float tensor.
    dct_basis: (h*w, h, w) DCT basis from generate_dct_matrix.
    returns:   (N, C*h*w, H//h, W//w) float32, matching the PyTorch grouped conv.
    """
    N, C, H, W = x.shape
    Hb, Wb = H // h, W // w
    hw = h * w
    B, P = N * C, Hb * Wb

    # stride-h conv silently drops trailing rows/cols that don't fill a block
    x = x[:, :, : Hb * h, : Wb * w]

    # Patch extraction (im2col of the grouped conv), lane-dense so the Pallas
    # output reshapes for free into the PyTorch layout.  With allow_input_fusion
    # below, XLA is allowed to fuse this producer into the kernel's input
    # pipeline instead of materializing patches_t in HBM (saves a full extra
    # read+write pass of the activation tensor — review item 1, option b).
    # TODO(synk): doing the patch rearrangement fully inside the kernel needs a
    # lane->sublane relayout ((bt, h, W) -> (bt, h*w, Wb)) whose Mosaic lowering
    # is not uniformly supported; the fused-producer formulation is the robust one.
    patches_t = (
        x.reshape(B, Hb, h, Wb, w)
        .transpose(0, 2, 4, 1, 3)                   # (B, h, w, Hb, Wb)
        .reshape(B, hw, P)
        .astype(stream_dtype)
    )
    # DCT basis as (uv, ij): out[uv] = sum_ij D[uv, ij] * patch[ij]
    d = dct_basis.reshape(hw, hw).astype(stream_dtype)

    elt = np.dtype(stream_dtype).itemsize
    bt, pt = _choose_tiles(B, P, hw, elt, max_lane_tile=max_lane_tile)

    nb, npt = pl.cdiv(B, bt), pl.cdiv(P, pt)
    # Put the axis with more steps first (better 2-TC split on v7x; harmless on
    # single-core chips).  Both axes are independent -> "parallel".
    if npt >= nb:
        grid = (npt, nb)
        blk_map = lambda j, i: (i, 0, j)
    else:
        grid = (nb, npt)
        blk_map = lambda i, j: (i, 0, j)
    d_map = lambda *_: (0, 0)

    # Deliberate VMEM budget: double-buffered input + output blocks plus basis,
    # with slack; capped at 48 MiB so it also fits v7x's 64 MiB/TC and is well
    # inside v5e/v6e's 128 MiB.
    in_blk = bt * hw * pt * elt
    out_blk = bt * hw * pt * 4
    vmem_limit = int(min(48 << 20, max(32 << 20, 3 * (in_blk + out_blk))))

    out = pl.pallas_call(
        _make_dct_kernel(bt),
        out_shape=jax.ShapeDtypeStruct((B, hw, P), jnp.float32),
        grid=grid,
        in_specs=[
            pl.BlockSpec((hw, hw), d_map),           # basis: DMA'd once, VMEM-resident
            pl.BlockSpec((bt, hw, pt), blk_map),     # streaming patches
        ],
        out_specs=pl.BlockSpec((bt, hw, pt), blk_map),
        compiler_params=pltpu.CompilerParams(
            dimension_semantics=("parallel", "parallel"),
            vmem_limit_bytes=vmem_limit,
            allow_input_fusion=[False, True] if fuse_patch_extract else None,
        ),
        cost_estimate=pl.CostEstimate(
            flops=2 * B * P * hw * hw,
            transcendentals=0,
            bytes_accessed=elt * (B * hw * P + hw * hw) + 4 * B * hw * P,
        ),
    )(d, patches_t)

    # (B, hw, P) == (N, C, hw, Hb, Wb) -> (N, C*hw, Hb, Wb): pure reshape, no copy
    return out.reshape(N, C * hw, Hb, Wb)


# --------------------------------------------------------------------- driver
if __name__ == "__main__":
    h = w = 8

    dct_basis = jnp.asarray(generate_dct_matrix(h=h, w=w), dtype=jnp.float32)
    D = dct_basis.reshape(h * w, h * w)  # (uv, ij)

    def reference(x):
        N, C, H, W = x.shape
        Hb, Wb = H // h, W // w
        xc = x[:, :, : Hb * h, : Wb * w]
        patches = (
            xc.reshape(N, C, Hb, h, Wb, w)
            .transpose(0, 1, 2, 4, 3, 5)
            .reshape(N, C, Hb, Wb, h * w)
        )
        return jnp.einsum("nchwk,uk->ncuhw", patches, D).reshape(
            N, C * h * w, Hb, Wb
        )

    key = jax.random.PRNGKey(0)
    cases = [
        (2, 4, 16, 16),    # tiny: P=4, full-extent lane block, batch-tiled
        (2, 3, 128, 128),  # P=256, full-extent lane block
        (1, 3, 120, 120),  # P=225 (non multiple of 128), still a single full block
        (1, 2, 232, 232),  # P=841 > 512: 128-multiple lane tile + ragged masked tail
    ]
    for idx, (N, C, H, W) in enumerate(cases):
        key, sub = jax.random.split(key)
        x = jax.random.normal(sub, (N, C, H, W), dtype=jnp.float32)
        out = jax.block_until_ready(dct_layer_forward(x, dct_basis, h=h, w=w))
        ref = reference(x)
        assert out.shape == ref.shape, (idx, out.shape, ref.shape)
        max_err = float(jnp.max(jnp.abs(out - ref)))
        assert jnp.allclose(out, ref, atol=2e-4, rtol=2e-4), (idx, max_err)

    print("KERNEL_OK")
</pallas_src>

<mosaic_0001>
module attributes {stable_mosaic.version = 11 : i64} {
  func.func @kernel(%arg0: i32, %arg1: i32, %arg2: memref<64x64xf32, #tpu.memory_space<vmem>>, %arg3: memref<2x64x4xf32, #tpu.memory_space<vmem>>, %arg4: memref<2x64x4xf32, #tpu.memory_space<vmem>>) attributes {dimension_semantics = [#tpu.dimension_semantics<parallel>, #tpu.dimension_semantics<parallel>], iteration_bounds = array<i64: 4, 1>, scalar_prefetch = 0 : i64, scratch_operands = 0 : i64, tpu.core_type = #tpu.core_type<tc>, window_params = [{pipeline_mode = #tpu.pipeline_mode<synchronous>, transform_indices = @transform_0, window_bounds = array<i64: 64, 64>}, {transform_indices = @transform_1, window_bounds = array<i64: 2, 64, 4>}, {transform_indices = @transform_2, window_bounds = array<i64: 2, 64, 4>}]} {
    %c0 = arith.constant 0 : index
    %c0_0 = arith.constant 0 : index
    %0 = vector.load %arg2[%c0, %c0_0] : memref<64x64xf32, #tpu.memory_space<vmem>>, vector<64x64xf32>
    %1 = vector.shape_cast %0 : vector<64x64xf32> to vector<1x64x64xf32>
    %2 = vector.shape_cast %1 : vector<1x64x64xf32> to vector<1x64x64xf32>
    %3 = vector.broadcast %2 : vector<1x64x64xf32> to vector<2x64x64xf32>
    %c0_1 = arith.constant 0 : index
    %c0_2 = arith.constant 0 : index
    %c0_3 = arith.constant 0 : index
    %4 = vector.load %arg3[%c0_1, %c0_2, %c0_3] : memref<2x64x4xf32, #tpu.memory_space<vmem>>, vector<2x64x4xf32>
    %cst = arith.constant dense<0.000000e+00> : vector<2x64x4xf32>
    %5 = tpu.matmul %3, %4, %cst {dimension_numbers = #tpu.dot_dimension_numbers<[2], [1], [1], [2], [0, 0, 0, 1, 1, 2], [0], [0]>} : vector<2x64x64xf32>, vector<2x64x4xf32>, vector<2x64x4xf32> -> vector<2x64x4xf32>
    %c0_4 = arith.constant 0 : index
    %c0_5 = arith.constant 0 : index
    %c0_6 = arith.constant 0 : index
    %6 = vector.load %arg4[%c0_4, %c0_5, %c0_6] : memref<2x64x4xf32, #tpu.memory_space<vmem>>, vector<2x64x4xf32>
    tpu.vector_store %arg4[%c0_4, %c0_5, %c0_6], %5 {strides = array<i32>} : memref<2x64x4xf32, #tpu.memory_space<vmem>>, vector<2x64x4xf32>,
    return
  }
  func.func @transform_0(%arg0: i32, %arg1: i32) -> (i32, i32) {
    %c0_i32 = arith.constant 0 : i32
    %c0_i32_0 = arith.constant 0 : i32
    %c0_i32_1 = arith.constant 0 : i32
    return %c0_i32, %c0_i32_0 : i32, i32
  }
  func.func @transform_1(%arg0: i32, %arg1: i32) -> (i32, i32, i32) {
    %c0_i32 = arith.constant 0 : i32
    %c0_i32_0 = arith.constant 0 : i32
    return %arg0, %c0_i32, %arg1 : i32, i32, i32
  }
  func.func @transform_2(%arg0: i32, %arg1: i32) -> (i32, i32, i32) {
    %c0_i32 = arith.constant 0 : i32
    %c0_i32_0 = arith.constant 0 : i32
    return %arg0, %c0_i32, %arg1 : i32, i32, i32
  }
}

</mosaic_0001>

<bundles_post_ra>
// kernel: dct_layer_forward.1
= control target key start
LH: loop header
LB: loop body
LE: loop exit
PB: predicated region body
PF: predicated region fallthrough
CT: control target
= control target key end

     0   :  { %s760_s9 = smov 0   ;;  %s762_s10 = smov 0   ;;  %s874_s0 = inlined_call_operand.vmem [shape: f32[64,64], index: 0, kind: input, shape index: {}]   ;;  %s875_s1 = inlined_call_operand.vmem [shape: f32[8,64,4], index: 1, kind: input, shape index: {}]   ;;  %s876_s2 = inlined_call_operand.vmem [shape: f32[8,64,4], index: 2, kind: output, shape index: {}]  }
   0x1   :  { %s764_s11 = smov 0  }
   0x2 LB: > { %s24_s12 = sadd.s32 1, %s739_s10  ;;  %p550_p0 = scmp.ge.s32.totalorder %s743_s11, 1  ;;  %s743_s11 = sphi %s764_s11, %s12_s11   ;;  %s739_s10 = sphi %s762_s10, %s878_s10   ;;  %s735_s9 = sphi %s760_s9, %s877_s9  }
   0x3   : > { %p26_p1 = scmp.ge.s32.totalorder %s24_s12, 4  ;;  %p133_p2 = scmp.lt.s32.totalorder %s743_s11, 5 }
   0x5   : > { %s880_s12 = smov (%p26_p1, %s24_s12), 0  ;;  %p134_p3 = pnand %p550_p0, %p133_p2 }
   0x6   : > { %s551_s13 = sshll.u32 (!%p134_p3), %s735_s9, 1  ;;  %v183_v0 = vld [vmem:[%s874_s0] sm:$0xff] (!%p134_p3)  ;;  %vm207_vm0 = vcmask (!%p134_p3), 523264   ;;  %v184_v25 = vld [vmem:[%s874_s0 + $0x8] sm:$0xff] (!%p134_p3)  ;;  %v185_v26 = vld [vmem:[%s874_s0 + $0x10] sm:$0xff] (!%p134_p3)  ;;  %vm442_vm1 = vcmask (!%p134_p3), 31744  }
   0x7   : > { %137 = sbr.rel (%p134_p3) target bundleno = 263 (0x107), region = 28  ;;  %p164_p4 = scmp.lt.s32.totalorder (!%p134_p3), %s551_s13, 7  ;;  %625 = vmatprep.mubr.msk.f32.mxu0 (!%p134_p3), %vm207_vm0, %v183_v0  ;;  %653 = vmatprep.mubr.msk.f32.mxu1 (!%p134_p3), %vm207_vm0, %v183_v0  ;;  %v186_v27 = vld [vmem:[%s874_s0 + $0x18] sm:$0xff] (!%p134_p3)  ;;  %v187_v28 = vld [vmem:[%s874_s0 + $0x20] sm:$0xff] (!%p134_p3)  ;;  %v188_v29 = vld [vmem:[%s874_s0 + $0x28] sm:$0xff] (!%p134_p3) }
   0x8   : > { %v189_v30 = vld [vmem:[%s874_s0 + $0x30] sm:$0xff] (!%p134_p3)  ;;  %v190_v31 = vld [vmem:[%s874_s0 + $0x38] sm:$0xff] (!%p134_p3) }
   0xe   : > { %s882_s13 = smov (!%p164_p4, %s551_s13), 7 }
   0xf   : > { %s575_s16 = sshll.u32 %s882_s13, 6 }
  0x10   : > { %s171_s19 = scalar_lea.vmem %s875_s1, %s575_s16  ;;  %s831_s8 = scalar_lea.vmem %s876_s2, %s575_s16 }
  0x11   : > { %v191_v1 = vld [vmem:[%s171_s19] sm:$0xff]  ;;  %v192_v2 = vld [vmem:[%s171_s19 + $0x8] sm:$0xff]  ;;  %v193_v6 = vld [vmem:[%s171_s19 + $0x10] sm:$0xff] }
  0x12   : > { %v199_v3 = vld [vmem:[%s171_s19 + $0x40] sm:$0xff]  ;;  %v665_v4 = vpack.c.bf16 %v192_v2, %v191_v1  ;;  %v200_v5 = vld [vmem:[%s171_s19 + $0x48] sm:$0xff]  ;;  %v194_v7 = vld [vmem:[%s171_s19 + $0x18] sm:$0xff] }
  0x13   : > { %v681_v8 = vpack.c.bf16 %v200_v5, %v199_v3  ;;  %v669_v9 = vpack.c.bf16 %v194_v7, %v193_v6  ;;  %v201_v10 = vld [vmem:[%s171_s19 + $0x50] sm:$0xff]  ;;  %v202_v11 = vld [vmem:[%s171_s19 + $0x58] sm:$0xff]  ;;  %v195_v12 = vld [vmem:[%s171_s19 + $0x20] sm:$0xff] }
  0x14   : > { %666 = vmatprep.subr.bf16.mxu0 %v665_v4  ;;  %v685_v13 = vpack.c.bf16 %v202_v11, %v201_v10  ;;  %v196_v14 = vld [vmem:[%s171_s19 + $0x28] sm:$0xff]  ;;  %v203_v15 = vld [vmem:[%s171_s19 + $0x60] sm:$0xff]  ;;  %v197_v19 = vld [vmem:[%s171_s19 + $0x30] sm:$0xff] }
  0x15   : > { %v204_v16 = vld [vmem:[%s171_s19 + $0x68] sm:$0xff]  ;;  %682 = vmatprep.subr.bf16.mxu1 %v681_v8  ;;  %668 = vmatpush3.bf16.msra.mxu0 %v665_v4  ;;  %v673_v17 = vpack.c.bf16 %v196_v14, %v195_v12  ;;  %v198_v20 = vld [vmem:[%s171_s19 + $0x38] sm:$0xff]  ;;  %v205_v21 = vld [vmem:[%s171_s19 + $0x70] sm:$0xff] }
  0x16   : > { %684 = vmatpush3.bf16.msra.mxu1 %v681_v8  ;;  %670 = vmatprep.subr.bf16.mxu0 %v669_v9  ;;  %v689_v18 = vpack.c.bf16 %v204_v16, %v203_v15  ;;  %v206_v22 = vld [vmem:[%s171_s19 + $0x78] sm:$0xff]  ;;  %v677_v23 = vpack.c.bf16 %v198_v20, %v197_v19 }
  0x17   : > { %686 = vmatprep.subr.bf16.mxu1 %v685_v13  ;;  %v693_v24 = vpack.c.bf16 %v206_v22, %v205_v21 }
  0x19   : > { %672 = vmatpush3.bf16.msra.mxu0 %v669_v9 }
  0x1a   : > { %688 = vmatpush3.bf16.msra.mxu1 %v685_v13  ;;  %674 = vmatprep.subr.bf16.mxu0 %v673_v17 }
  0x1b   : > { %690 = vmatprep.subr.bf16.mxu1 %v689_v18 }
  0x1d   : > { %676 = vmatpush3.bf16.msra.mxu0 %v673_v17 }
  0x1e   : > { %692 = vmatpush3.bf16.msra.mxu1 %v689_v18  ;;  %678 = vmatprep.subr.bf16.mxu0 %v677_v23 }
  0x1f   : > { %694 = vmatprep.subr.bf16.mxu1 %v693_v24 }
  0x21   : > { %680 = vmatpush3.bf16.msra.mxu0 %v677_v23 }
  0x22   : > { %696 = vmatpush3.bf16.msra.mxu1 %v693_v24 }
  0x24   : > { %626 = vmatmul.mubr.msk.f32.vlgmr.msra.gmra.mrb[0].mxu0 %vm207_vm0, %v184_v25 }
  0x25   : > { %654 = vmatmul.mubr.msk.f32.vlgmr.msra.gmra.mrb[0].mxu1 %vm207_vm0, %v184_v25  ;;  %628 = vmatprep.mubr.msk.f32.mxu0 %vm207_vm0, %v185_v26 }
  0x26   : > { %656 = vmatprep.mubr.msk.f32.mxu1 %vm207_vm0, %v185_v26 }
  0x28   : > { %629 = vmatmul.mubr.msk.f32.gmra.mrb[2].mxu0 %vm207_vm0, %v186_v27 }
  0x29   : > { %657 = vmatmul.mubr.msk.f32.gmra.mrb[2].mxu1 %vm207_vm0, %v186_v27  ;;  %631 = vmatprep.mubr.msk.f32.mxu0 %vm207_vm0, %v187_v28 }
  0x2a   : > { %659 = vmatprep.mubr.msk.f32.mxu1 %vm207_vm0, %v187_v28 }
  0x2c   : > { %632 = vmatmul.mubr.msk.f32.gmra.mrb[4].mxu0 %vm207_vm0, %v188_v29 }
  0x2d   : > { %660 = vmatmul.mubr.msk.f32.gmra.mrb[4].mxu1 %vm207_vm0, %v188_v29  ;;  %634 = vmatprep.mubr.msk.f32.mxu0 %vm207_vm0, %v189_v30 }
  0x2e   : > { %662 = vmatprep.mubr.msk.f32.mxu1 %vm207_vm0, %v189_v30 }
  0x30   : > { %635 = vmatmul.mubr.msk.f32.gmra.mrb[6].mxu0 %vm207_vm0, %v190_v31 }
  0x31   : > { %663 = vmatmul.mubr.msk.f32.gmra.mrb[6].mxu1 %vm207_vm0, %v190_v31 }
  0xf7   : > { %v627_v32 = vpop.f32.mrb[0].mxu0 }
  0xf8   : > { %444 = vst.msk [vmem:[%s831_s8 + $0x8] sm:$0xff] %vm442_vm1, %v627_v32  ;;  %v655_v33 = vpop.f32.mrb[0].mxu1  ;;  %v298_v34 = vpop.f32.mrb[1].mxu0 }
  0xf9   : > { %452 = vst.msk [vmem:[%s831_s8 + $0x48] sm:$0xff] %vm442_vm1, %v655_v33  ;;  %443 = vst.msk [vmem:[%s831_s8] sm:$0xff] %vm442_vm1, %v298_v34  ;;  %v403_v35 = vpop.f32.mrb[1].mxu1 }
  0xfa   : > { %451 = vst.msk [vmem:[%s831_s8 + $0x40] sm:$0xff] %vm442_vm1, %v403_v35 }
  0xfb   : > { %v630_v36 = vpop.f32.mrb[2].mxu0 }
  0xfc   : > { %446 = vst.msk [vmem:[%s831_s8 + $0x18] sm:$0xff] %vm442_vm1, %v630_v36  ;;  %v658_v37 = vpop.f32.mrb[2].mxu1  ;;  %v308_v38 = vpop.f32.mrb[3].mxu0 }
  0xfd   : > { %454 = vst.msk [vmem:[%s831_s8 + $0x58] sm:$0xff] %vm442_vm1, %v658_v37  ;;  %445 = vst.msk [vmem:[%s831_s8 + $0x10] sm:$0xff] %vm442_vm1, %v308_v38  ;;  %v413_v39 = vpop.f32.mrb[3].mxu1 }
  0xfe   : > { %453 = vst.msk [vmem:[%s831_s8 + $0x50] sm:$0xff] %vm442_vm1, %v413_v39 }
  0xff   : > { %v633_v40 = vpop.f32.mrb[4].mxu0 }
 0x100   : > { %448 = vst.msk [vmem:[%s831_s8 + $0x28] sm:$0xff] %vm442_vm1, %v633_v40  ;;  %v661_v41 = vpop.f32.mrb[4].mxu1  ;;  %v318_v42 = vpop.f32.mrb[5].mxu0 }
 0x101   : > { %456 = vst.msk [vmem:[%s831_s8 + $0x68] sm:$0xff] %vm442_vm1, %v661_v41  ;;  %447 = vst.msk [vmem:[%s831_s8 + $0x20] sm:$0xff] %vm442_vm1, %v318_v42  ;;  %v423_v43 = vpop.f32.mrb[5].mxu1 }
 0x102   : > { %455 = vst.msk [vmem:[%s831_s8 + $0x60] sm:$0xff] %vm442_vm1, %v423_v43 }
 0x103   : > { %v636_v44 = vpop.f32.mrb[6].mxu0 }
 0x104   : > { %450 = vst.msk [vmem:[%s831_s8 + $0x38] sm:$0xff] %vm442_vm1, %v636_v44  ;;  %v664_v45 = vpop.f32.mrb[6].mxu1  ;;  %v328_v46 = vpop.f32.mrb[7].mxu0 }
 0x105   : > { %458 = vst.msk [vmem:[%s831_s8 + $0x78] sm:$0xff] %vm442_vm1, %v664_v45  ;;  %449 = vst.msk [vmem:[%s831_s8 + $0x30] sm:$0xff] %vm442_vm1, %v328_v46  ;;  %v433_v47 = vpop.f32.mrb[7].mxu1 }
 0x106   : > { %457 = vst.msk [vmem:[%s831_s8 + $0x70] sm:$0xff] %vm442_vm1, %v433_v47 }
 0x107 PF: > { %s12_s11 = sadd.s32 1, %s743_s11   ;;  %s877_s9 = smov %s739_s10 }
 0x108   : > { %p9_p5 = scmp.ge.s32.totalorder %s12_s11, 6   ;;  %s878_s10 = smov %s880_s12 }
 0x10a   :  { %11 = sbr.rel (!%p9_p5) target bundleno = 2 (0x2), region = 58 }

</bundles_post_ra>
